<compile_context>
chip_gen: v7x
topology: tpu7x:2x2x1
jax: 0.10.0
libtpu: 0.0.40
codegen_flags: <defaults>
</compile_context>

<pallas_src>
import functools

import jax
import jax.numpy as jnp
from jax.experimental import pallas as pl
from jax.experimental.pallas import tpu as pltpu


# ----------------------------------------------------------------------------------------
# Small helpers
# ----------------------------------------------------------------------------------------
def _vmem_limit_bytes():
    """Derive the scoped-VMEM limit per generation, leaving headroom (review item #4)."""
    phys = 64 * 1024 * 1024
    try:
        phys = int(getattr(pltpu.get_tpu_info(), "vmem_capacity_bytes", phys))
    except Exception:
        pass
    return min(phys * 3 // 4, 100 * 1024 * 1024)


def _pad_hw(v, top, bottom, left, right):
    """In-register zero pad of a (N, H, W, C) value via concatenation (no padded HBM buffer)."""
    dt = v.dtype
    if top or bottom:
        n, _, w, c = v.shape
        rows = []
        if top:
            rows.append(jnp.zeros((n, top, w, c), dt))
        rows.append(v)
        if bottom:
            rows.append(jnp.zeros((n, bottom, w, c), dt))
        v = jnp.concatenate(rows, axis=1)
    if left or right:
        n, h, _, c = v.shape
        cols = []
        if left:
            cols.append(jnp.zeros((n, h, left, c), dt))
        cols.append(v)
        if right:
            cols.append(jnp.zeros((n, h, right, c), dt))
        v = jnp.concatenate(cols, axis=2)
    return v


def _conv3x3_taps(vp, w_ref, H, W, Cout):
    """3x3 / padding=1 conv as 9 accumulated tap matmuls (no (M, 9*C) im2col patch).

    vp:    (N, H+2, W+2, C) zero-padded activations (matmul dtype).
    w_ref: (9, C, Cout) weights, tap index kh*3 + kw.
    Returns a (N*H*W, Cout) float32 accumulator.
    """
    N = vp.shape[0]
    C = vp.shape[-1]
    M = N * H * W
    acc = jnp.zeros((M, Cout), jnp.float32)
    for kh in range(3):
        for kw in range(3):
            tap = vp[:, kh:kh + H, kw:kw + W, :].reshape(M, C)
            acc = acc + jnp.dot(tap, w_ref[kh * 3 + kw],
                                preferred_element_type=jnp.float32)
    return acc


def _bn_relu(y, gamma, beta, eps, M):
    """Training-mode BatchNorm2d + ReLU on the flat (M, C) conv output.

    Batch statistics over all M = N*H*W positions per channel, biased variance (what
    nn.BatchNorm2d uses to normalize in train mode).  Two-pass (centered) variance for
    numerical robustness.  Conv biases were dropped upstream: a per-channel constant is
    exactly removed by the mean subtraction, so the output is unchanged.
    """
    inv_m = 1.0 / M
    mean = jnp.sum(y, axis=0, keepdims=True) * inv_m          # (1, C)
    yc = y - mean
    var = jnp.sum(yc * yc, axis=0, keepdims=True) * inv_m     # biased variance
    scale = gamma * jax.lax.rsqrt(var + eps)
    return jnp.maximum(yc * scale + beta, 0.0)


# ----------------------------------------------------------------------------------------
# Fused [pad-up -> channel-concat -> conv -> BN -> ReLU -> conv -> BN -> ReLU] kernel
# ----------------------------------------------------------------------------------------
def upconv_block_kernel(up_ref, skip_ref, w1_ref, w2_ref, bn_ref, out_ref, *,
                        N, H, W, Cout, eps, pad_t, pad_b, pad_l, pad_r):
    dt = w1_ref.dtype
    M = N * H * W

    bnp = bn_ref[...]                                  # (4, Cout): [gamma1, beta1, gamma2, beta2]
    g1, b1 = bnp[0:1, :], bnp[1:2, :]
    g2, b2 = bnp[2:3, :], bnp[3:4, :]

    # `up` gets (a) the F.pad to connect's size (left/top = diff//2, right/bottom = remainder,
    # matching the PyTorch module) and (b) the conv halo pad of 1, fused into one in-register
    # pad; `connect` only needs the conv halo.  torch.cat(dim=1) becomes a lane-axis concat.
    up = _pad_hw(up_ref[...].astype(dt), 1 + pad_t, 1 + pad_b, 1 + pad_l, 1 + pad_r)
    sk = _pad_hw(skip_ref[...].astype(dt), 1, 1, 1, 1)
    xp = jnp.concatenate([up, sk], axis=-1)                      # (N, H+2, W+2, Cin)

    # conv1 + BN1 + ReLU  (conv bias dropped: cancelled by the BN mean subtraction)
    y1 = _conv3x3_taps(xp, w1_ref, H, W, Cout)                   # (M, Cout) f32
    h1 = _bn_relu(y1, g1, b1, eps, M)

    # conv2 + BN2 + ReLU, consuming h1 directly (no HBM round trip between the two convs)
    h1p = _pad_hw(h1.astype(dt).reshape(N, H, W, Cout), 1, 1, 1, 1)
    y2 = _conv3x3_taps(h1p, w2_ref, H, W, Cout)
    o = _bn_relu(y2, g2, b2, eps, M)

    # Natural-layout store.  For production Cout >= 128 this is already lane-dense; at toy
    # Cout the masked partial stores are accepted (no W-slice concat epilogue).
    out_ref[...] = o.reshape(N, H, W, Cout)


def make_upconv_block(N, H, W, Cout, eps, pads):
    pad_t, pad_b, pad_l, pad_r = pads
    vmem = pl.BlockSpec(memory_space=pltpu.MemorySpace.VMEM)
    kernel = functools.partial(upconv_block_kernel, N=N, H=H, W=W, Cout=Cout, eps=eps,
                               pad_t=pad_t, pad_b=pad_b, pad_l=pad_l, pad_r=pad_r)
    return pl.pallas_call(
        kernel,
        out_shape=jax.ShapeDtypeStruct((N, H, W, Cout), jnp.float32),
        in_specs=[vmem] * 5,
        out_specs=vmem,
        compiler_params=pltpu.CompilerParams(vmem_limit_bytes=_vmem_limit_bytes()),
    )


# ----------------------------------------------------------------------------------------
# ConvTranspose2d(Cin, Cout, kernel_size=2, stride=2) as a tiled Pallas matmul kernel
# ----------------------------------------------------------------------------------------
def _deconv_kernel(x_ref, w_ref, b_ref, o_ref, *, rows, Win, Cout2):
    """One block of low-res rows -> interleaved up-sampled layout.

    x_ref: (rows*Win, Cin)     flattened low-res pixels (matmul dtype)
    w_ref: (2, Cin, 2*Cout)    weights, leading dim = output-row parity ph, cols = (pw, co)
    b_ref: (2, 1, 2*Cout)      bias, same packing (float32)
    o_ref: (rows, 2, Win, 2*Cout)  -- row-major identical to (rows*2, Win*2, Cout)
    """
    xv = x_ref[...]
    parts = []
    for ph in range(2):
        y = jnp.dot(xv, w_ref[ph], preferred_element_type=jnp.float32) + b_ref[ph]
        parts.append(y.astype(o_ref.dtype).reshape(rows, 1, Win, Cout2))
    o_ref[...] = jnp.concatenate(parts, axis=1)


def _pick_rows(n_hin, win):
    """Low-res image rows per grid step; keep the x block sublane-aligned (multiple of 8)."""
    rh = max(1, min(n_hin, 8))
    while rh < n_hin and (rh * win) % 8 != 0:
        rh += 1
    return rh


def conv_transpose_s2(x_nhwc, w_dec, b_dec, matmul_dtype):
    """Transposed conv with kernel_size == stride == 2 (the standard UNet up-step).

    Every output pixel receives exactly one (kh, kw) tap, so the op is a plain matmul per
    output-row parity; the kernel writes the interleaved layout directly, so the wrapper's
    "spatial scatter" is a free row-major reshape (no XLA transpose pass, no jnp.pad pass).
    """
    N, Hin, Win, Cin = x_nhwc.shape
    _, Cout, K, K2 = w_dec.shape
    if K != 2 or K2 != 2:
        # TODO(synk): general deconv_kernel_size / stride (overlapping taps) not implemented.
        raise NotImplementedError("only deconv_kernel_size=2 with stride=2 is implemented")

    # PyTorch ConvTranspose2d weight (Cin, Cout, kh, kw) -> (ph=kh, Cin, kw*Cout + co)
    w_pack = jnp.transpose(w_dec, (2, 0, 3, 1)).reshape(2, Cin, 2 * Cout).astype(matmul_dtype)
    b_pack = jnp.tile(b_dec.reshape(1, 1, Cout), (2, 1, 2)).astype(jnp.float32)
    x_flat = x_nhwc.reshape(N * Hin * Win, Cin).astype(matmul_dtype)

    n_hin = N * Hin
    rh = _pick_rows(n_hin, Win)
    kernel = functools.partial(_deconv_kernel, rows=rh, Win=Win, Cout2=2 * Cout)
    y = pl.pallas_call(
        kernel,
        out_shape=jax.ShapeDtypeStruct((n_hin, 2, Win, 2 * Cout), matmul_dtype),
        grid=(pl.cdiv(n_hin, rh),),
        in_specs=[pl.BlockSpec((rh * Win, Cin), lambda i: (i, 0)),
                  # constant index maps: weights/bias stay VMEM-resident across grid steps
                  pl.BlockSpec((2, Cin, 2 * Cout), lambda i: (0, 0, 0)),
                  pl.BlockSpec((2, 1, 2 * Cout), lambda i: (0, 0, 0))],
        out_specs=pl.BlockSpec((rh, 2, Win, 2 * Cout), lambda i: (i, 0, 0, 0)),
        compiler_params=pltpu.CompilerParams(dimension_semantics=("parallel",)),
    )(x_flat, w_pack, b_pack)

    # (N*Hin, 2, Win, 2*Cout) row-major IS (N, 2Hin, 2Win, Cout): metadata-only reshape.
    return y.reshape(N, 2 * Hin, 2 * Win, Cout)


# ----------------------------------------------------------------------------------------
# Full UpConv forward (NCHW in / NCHW out, matching the PyTorch module)
# ----------------------------------------------------------------------------------------
def upconv_forward(inputs_nchw, connect_nchw, params, eps, matmul_dtype=jnp.bfloat16):
    """matmul_dtype=bf16 (default, recommended on v5e/v6e/v7x) keeps f32 accumulation; pass
    jnp.float32 for bit-level parity with the f32 PyTorch reference."""
    (w_dec, b_dec, w1, _b1_unused, g1, be1, w2, _b2_unused, g2, be2) = params
    N = inputs_nchw.shape[0]
    Cout = w_dec.shape[1]

    # --- ConvTranspose2d (stride 2), output already in interleaved NHWC layout ---
    x_nhwc = jnp.transpose(inputs_nchw, (0, 2, 3, 1))
    up = conv_transpose_s2(x_nhwc, w_dec, b_dec, matmul_dtype)        # (N, 2H, 2W, Cout)

    connect_nhwc = jnp.transpose(connect_nchw, (0, 2, 3, 1)).astype(matmul_dtype)
    Hc, Wc, C_skip = connect_nhwc.shape[1], connect_nhwc.shape[2], connect_nhwc.shape[3]
    dh, dw = Hc - up.shape[1], Wc - up.shape[2]
    if dh < 0 or dw < 0:
        # TODO(synk): negative diff (crop) never occurs in this UNet; not implemented.
        raise NotImplementedError("connect smaller than upsampled input is not supported")

    Cin = Cout + C_skip                                               # channels after torch.cat
    # Conv weights (Cout, Cin, 3, 3) -> tap layout (9, Cin, Cout); conv biases dropped (exactly
    # cancelled by training-mode BN mean subtraction).
    w1_pack = jnp.transpose(w1, (2, 3, 1, 0)).reshape(9, Cin, Cout).astype(matmul_dtype)
    w2_pack = jnp.transpose(w2, (2, 3, 1, 0)).reshape(9, Cout, Cout).astype(matmul_dtype)
    bn = jnp.stack([g1, be1, g2, be2], axis=0).astype(jnp.float32)    # (4, Cout)

    # --- fused [pad -> concat -> conv -> BN -> ReLU -> conv -> BN -> ReLU] kernel ---
    f = make_upconv_block(N, Hc, Wc, Cout, eps,
                          pads=(dh // 2, dh - dh // 2, dw // 2, dw - dw // 2))
    out_nhwc = f(up, connect_nhwc, w1_pack, w2_pack, bn)              # (N, Hc, Wc, Cout) f32

    return jnp.transpose(out_nhwc, (0, 3, 1, 2))                      # NCHW


# ----------------------------------------------------------------------------------------
# Deterministic synthetic parameters (shapes match the nn.Module layers)
# ----------------------------------------------------------------------------------------
def init_params(key, in_channels, out_channels, deconv_k=2):
    ks = jax.random.split(key, 6)

    def u(k, shape, fan):
        bound = float(fan) ** -0.5
        return jax.random.uniform(k, shape, jnp.float32, -bound, bound)

    # ConvTranspose2d(in, out, K, stride=2): weight (in, out, K, K)
    fan_d = in_channels * deconv_k * deconv_k
    w_dec = u(ks[0], (in_channels, out_channels, deconv_k, deconv_k), fan_d)
    b_dec = u(ks[1], (out_channels,), fan_d)
    # Conv2d(in, out, 3, padding=1) / Conv2d(out, out, 3, padding=1)
    w1 = u(ks[2], (out_channels, in_channels, 3, 3), in_channels * 9)
    b1 = u(ks[3], (out_channels,), in_channels * 9)     # inert: cancelled by training-mode BN
    w2 = u(ks[4], (out_channels, out_channels, 3, 3), out_channels * 9)
    b2 = u(ks[5], (out_channels,), out_channels * 9)    # inert: cancelled by training-mode BN
    # BatchNorm2d default init
    g1 = jnp.ones((out_channels,), jnp.float32)
    be1 = jnp.zeros((out_channels,), jnp.float32)
    g2 = jnp.ones((out_channels,), jnp.float32)
    be2 = jnp.zeros((out_channels,), jnp.float32)
    return (w_dec, b_dec, w1, b1, g1, be1, w2, b2, g2, be2)


if __name__ == "__main__":
    batch_norm_eps = 1e-5
    batch_norm_momentum = 0.1        # running-stats only; no effect on the forward output

    in_channels, out_channels = 16, 8
    N, Hin, Win = 2, 8, 8            # deconv (stride 2) -> 16x16, matching `connect`

    key = jax.random.PRNGKey(0)
    k_in, k_skip, k_p = jax.random.split(key, 3)
    inputs = jax.random.normal(k_in, (N, in_channels, Hin, Win), jnp.float32)
    connect = jax.random.normal(
        k_skip, (N, in_channels - out_channels, 2 * Hin, 2 * Win), jnp.float32)
    params = init_params(k_p, in_channels, out_channels, deconv_k=2)

    out = upconv_forward(inputs, connect, params, batch_norm_eps)
    jax.block_until_ready(out)
    assert out.shape == (N, out_channels, 2 * Hin, 2 * Win)
    print("KERNEL_OK")
</pallas_src>

<mosaic_0001>
module attributes {stable_mosaic.version = 11 : i64} {
  func.func @_deconv_kernel(%arg0: i32, %arg1: memref<64x16xbf16, #tpu.memory_space<vmem>>, %arg2: memref<2x16x16xbf16, #tpu.memory_space<vmem>>, %arg3: memref<2x1x16xf32, #tpu.memory_space<vmem>>, %arg4: memref<8x2x8x16xbf16, #tpu.memory_space<vmem>>) attributes {dimension_semantics = [#tpu.dimension_semantics<parallel>], iteration_bounds = array<i64: 2>, scalar_prefetch = 0 : i64, scratch_operands = 0 : i64, tpu.core_type = #tpu.core_type<tc>, window_params = [{transform_indices = @transform_0, window_bounds = array<i64: 64, 16>}, {pipeline_mode = #tpu.pipeline_mode<synchronous>, transform_indices = @transform_1, window_bounds = array<i64: 2, 16, 16>}, {pipeline_mode = #tpu.pipeline_mode<synchronous>, transform_indices = @transform_2, window_bounds = array<i64: 2, 1, 16>}, {transform_indices = @transform_3, window_bounds = array<i64: 8, 2, 8, 16>}]} {
    %c0 = arith.constant 0 : index
    %c0_0 = arith.constant 0 : index
    %0 = vector.load %arg1[%c0, %c0_0] : memref<64x16xbf16, #tpu.memory_space<vmem>>, vector<64x16xbf16>
    %c0_1 = arith.constant 0 : index
    %c0_2 = arith.constant 0 : index
    %c0_3 = arith.constant 0 : index
    %1 = vector.load %arg2[%c0_1, %c0_2, %c0_3] : memref<2x16x16xbf16, #tpu.memory_space<vmem>>, vector<1x16x16xbf16>
    %2 = vector.shape_cast %1 : vector<1x16x16xbf16> to vector<16x16xbf16>
    %cst = arith.constant dense<0.000000e+00> : vector<64x16xf32>
    %3 = tpu.matmul %0, %2, %cst {dimension_numbers = #tpu.dot_dimension_numbers<[1], [0], [0], [1], [0, 0, 1, 1], [], []>} : vector<64x16xbf16>, vector<16x16xbf16>, vector<64x16xf32> -> vector<64x16xf32>
    %c0_4 = arith.constant 0 : index
    %c0_5 = arith.constant 0 : index
    %c0_6 = arith.constant 0 : index
    %4 = vector.load %arg3[%c0_4, %c0_5, %c0_6] : memref<2x1x16xf32, #tpu.memory_space<vmem>>, vector<1x1x16xf32>
    %5 = vector.shape_cast %4 : vector<1x1x16xf32> to vector<1x16xf32>
    %6 = vector.broadcast %5 : vector<1x16xf32> to vector<64x16xf32>
    %7 = arith.addf %3, %6 : vector<64x16xf32>
    %8 = arith.truncf %7 : vector<64x16xf32> to vector<64x16xbf16>
    %9 = vector.shape_cast %8 : vector<64x16xbf16> to vector<8x1x8x16xbf16>
    %c1 = arith.constant 1 : index
    %c0_7 = arith.constant 0 : index
    %c0_8 = arith.constant 0 : index
    %10 = vector.load %arg2[%c1, %c0_7, %c0_8] : memref<2x16x16xbf16, #tpu.memory_space<vmem>>, vector<1x16x16xbf16>
    %11 = vector.shape_cast %10 : vector<1x16x16xbf16> to vector<16x16xbf16>
    %cst_9 = arith.constant dense<0.000000e+00> : vector<64x16xf32>
    %12 = tpu.matmul %0, %11, %cst_9 {dimension_numbers = #tpu.dot_dimension_numbers<[1], [0], [0], [1], [0, 0, 1, 1], [], []>} : vector<64x16xbf16>, vector<16x16xbf16>, vector<64x16xf32> -> vector<64x16xf32>
    %c1_10 = arith.constant 1 : index
    %c0_11 = arith.constant 0 : index
    %c0_12 = arith.constant 0 : index
    %13 = vector.load %arg3[%c1_10, %c0_11, %c0_12] : memref<2x1x16xf32, #tpu.memory_space<vmem>>, vector<1x1x16xf32>
    %14 = vector.shape_cast %13 : vector<1x1x16xf32> to vector<1x16xf32>
    %15 = vector.broadcast %14 : vector<1x16xf32> to vector<64x16xf32>
    %16 = arith.addf %12, %15 : vector<64x16xf32>
    %17 = arith.truncf %16 : vector<64x16xf32> to vector<64x16xbf16>
    %18 = vector.shape_cast %17 : vector<64x16xbf16> to vector<8x1x8x16xbf16>
    %19 = tpu.concatenate %9, %18 in 1 : vector<8x1x8x16xbf16>, vector<8x1x8x16xbf16> -> vector<8x2x8x16xbf16>
    %c0_13 = arith.constant 0 : index
    %c0_14 = arith.constant 0 : index
    %c0_15 = arith.constant 0 : index
    %c0_16 = arith.constant 0 : index
    %20 = vector.load %arg4[%c0_13, %c0_14, %c0_15, %c0_16] : memref<8x2x8x16xbf16, #tpu.memory_space<vmem>>, vector<8x2x8x16xbf16>
    tpu.vector_store %arg4[%c0_13, %c0_14, %c0_15, %c0_16], %19 {strides = array<i32>} : memref<8x2x8x16xbf16, #tpu.memory_space<vmem>>, vector<8x2x8x16xbf16>,
    return
  }
  func.func @transform_0(%arg0: i32) -> (i32, i32) {
    %c0_i32 = arith.constant 0 : i32
    %c0_i32_0 = arith.constant 0 : i32
    return %arg0, %c0_i32 : i32, i32
  }
  func.func @transform_1(%arg0: i32) -> (i32, i32, i32) {
    %c0_i32 = arith.constant 0 : i32
    %c0_i32_0 = arith.constant 0 : i32
    %c0_i32_1 = arith.constant 0 : i32
    %c0_i32_2 = arith.constant 0 : i32
    return %c0_i32, %c0_i32_0, %c0_i32_1 : i32, i32, i32
  }
  func.func @transform_2(%arg0: i32) -> (i32, i32, i32) {
    %c0_i32 = arith.constant 0 : i32
    %c0_i32_0 = arith.constant 0 : i32
    %c0_i32_1 = arith.constant 0 : i32
    %c0_i32_2 = arith.constant 0 : i32
    return %c0_i32, %c0_i32_0, %c0_i32_1 : i32, i32, i32
  }
  func.func @transform_3(%arg0: i32) -> (i32, i32, i32, i32) {
    %c0_i32 = arith.constant 0 : i32
    %c0_i32_0 = arith.constant 0 : i32
    %c0_i32_1 = arith.constant 0 : i32
    %c0_i32_2 = arith.constant 0 : i32
    return %arg0, %c0_i32, %c0_i32_0, %c0_i32_1 : i32, i32, i32, i32
  }
}

</mosaic_0001>

<bundles_post_ra>
// kernel: tpu_custom_call.1
= control target key start
LH: loop header
LB: loop body
LE: loop exit
PB: predicated region body
PF: predicated region fallthrough
CT: control target
= control target key end

     0   :  { %8 = vsyncpa [#allocation3], 0  ;;  %s917_s0 = inlined_call_operand.vmem [shape: bf16[128,16], index: 0, kind: input, shape index: {}]   ;;  %s918_s1 = inlined_call_operand.vmem [shape: bf16[2,16,16], index: 1, kind: input, shape index: {}]   ;;  %s919_s2 = inlined_call_operand.vmem [shape: f32[2,1,16], index: 2, kind: input, shape index: {}]   ;;  %s920_s3 = inlined_call_operand.hbm [shape: bf16[16,2,8,16], index: 3, kind: output, shape index: {}]  }
   0x1   :  { %10 = vsyncpa [#allocation3 + $0x1], 0  ;;  %s764_s12 = smov 0   ;;  %s766_s13 = smov 0  }
   0x2   :  { %s768_s14 = smov 0   ;;  %s770_s15 = smov 0  }
   0x3 LB: > { %s785_s16 = sadd.s32 4294967295, %s739_s15   ;;  %s534_s17 = sadd.s32 4294967294, %s739_s15   ;;  %s739_s15 = sphi %s770_s15, %s926_s15   ;;  %s735_s14 = sphi %s768_s14, %s925_s14   ;;  %s731_s13 = sphi %s766_s13, %s924_s13   ;;  %s727_s12 = sphi %s764_s12, %s923_s12  }
   0x4   : > { %s789_s18 = sadd.s32 1, %s739_s15   ;;  %s91_s19 = sadd.s32 1, %s735_s14 }
   0x5   : > { %s88_s20 = ssub.s32 %s739_s15, %s789_s18  ;;  %p101_p0 = scmp.ne.s32.totalorder %s735_s14, %s731_s13 }
   0x6   : > { %p89_p1 = scmp.eq.s32.totalorder %s88_s20, 0  ;;  %p102_p2 = scmp.eq.s32.totalorder %s785_s16, 1 }
   0x7   : > { %p107_p3 = scmp.ne.s32.totalorder %s731_s13, %s727_s12  ;;  %p108_p4 = scmp.eq.s32.totalorder %s534_s17, 1 }
   0x8   : > { %s800_s21 = scalar_select %p89_p1, %s735_s14, %s91_s19  }
   0x9   : > { %p802_p5 = por %p102_p2, %p101_p0  ;;  %p806_p6 = por %p108_p4, %p107_p3 }
   0xa   : > { %p537_p7 = scmp.ge.s32.totalorder %s739_s15, 1  ;;  %p141_p8 = scmp.lt.s32.totalorder %s739_s15, 3 }
   0xc   : > { %p142_p9 = pnand %p537_p7, %p141_p8 }
   0xd   : > { %v671_v0 = vld [vmem:[%s918_s1] sm:$0xff] (!%p142_p9)   ;;  %s539_s26 = sshll.u32 (!%p142_p9), %s785_s16, 3  ;;  %v672_v1 = vld [vmem:[%s918_s1 + $0x8] sm:$0xff] (!%p142_p9)   ;;  %vm216_vm0 = vcmask (!%p142_p9), 130048   ;;  %s162_s6 = sand.u32 (!%p142_p9), 1, %s731_s13   ;;  %vm440_vm1 = vcmask (!%p142_p9), 125952  }
   0xe   : > { %145 = sbr.rel (%p142_p9) target bundleno = 268 (0x10c), region = 32  ;;  %p166_p10 = scmp.lt.s32.totalorder (!%p142_p9), %s539_s26, 15  ;;  %610 = vmatprep.subr.bf16.mxu0 (!%p142_p9), %v671_v0  ;;  %620 = vmatprep.subr.bf16.mxu1 (!%p142_p9), %v672_v1  ;;  %v541_v6 = vld [vmem:[%s919_s2] ss:$0 sm:$0xff] (!%p142_p9)  ;;  %v562_v7 = vld [vmem:[%s919_s2 + $0x1] ss:$0 sm:$0xff] (!%p142_p9) }
   0xf   : > { %611 = vmatpush3.bf16.msra.mxu0 (!%p142_p9), %v671_v0  ;;  %621 = vmatpush3.bf16.msra.mxu1 (!%p142_p9), %v672_v1  ;;  %s538_s11 = sshll.u32 (!%p142_p9), %s162_s6, 6  ;;  %s599_s19 = sshll.u32 (!%p142_p9), %s785_s16, 10 }
  0x10   : > { %s831_s17 = scalar_lea.vmem (!%p142_p9), [#allocation2], %s538_s11  ;;  %s858_s25 = scalar_lea.hbm (!%p142_p9), %s920_s3, %s599_s19 }
  0x11   : > { %s472_s20 = sshll.u32 (!%p142_p9), %s831_s17, 4  ;;  %s741_s28 = smov (!%p142_p9), [#allocation2]   ;;  %s860_s20 = int_to_ptr.vmem [resolvable:$true] %s472_s20 }
  0x12   : > { %s677_s27 = scalar_lea.vmem (!%p142_p9), %s860_s20, 1024 }
  0x13   : > { %p678_p11 = scmp.ne.s32.totalorder (!%p142_p9), %s860_s20, %s677_s27 }
  0x15   : > { %s928_s26 = smov (!%p166_p10, %s539_s26), 15  ;;  %p679_p12 = pnand %p678_p11, %p802_p5 }
  0x16   : > { %s540_s29 = sshll.u32 %s928_s26, 2  ;;  %s876_s26 = scalar_lea.sflag [#allocation3], %s162_s6 }
  0x17   : > { %s169_s5 = scalar_lea.vmem %s917_s0, %s540_s29  ;;  %p680_p13 = pneg %p679_p12 }
  0x18   : > { %v673_v2 = vld [vmem:[%s169_s5] sm:$0xff]   ;;  %v674_v3 = vld [vmem:[%s169_s5 + $0x8] sm:$0xff]   ;;  %v675_v4 = vld [vmem:[%s169_s5 + $0x10] sm:$0xff]   ;;  %s681_s29 = sshll.u32 %s741_s28, 4  ;;  %s682_s29 = int_to_ptr.vmem [resolvable:$false] %s681_s29 }
  0x19   : > { %612 = vmatprep.mubr.msk.bf16.mxu0 %vm216_vm0, %v673_v2  ;;  %622 = vmatprep.mubr.msk.bf16.mxu1 %vm216_vm0, %v673_v2  ;;  %v676_v5 = vld [vmem:[%s169_s5 + $0x18] sm:$0xff]   ;;  %s683_s30 = scalar_lea.vmem %s682_s29, 2048  ;;  %p684_p0 = scmp.lt.s32.totalorder %s860_s20, %s682_s29 }
  0x1a   : > { %613 = vmatmul.mubr.msk.bf16.vlgmr.msra.gmra.mrb[0].mxu0 %vm216_vm0, %v674_v3  ;;  %623 = vmatmul.mubr.msk.bf16.vlgmr.msra.gmra.mrb[0].mxu1 %vm216_vm0, %v674_v3  ;;  %p685_p1 = scmp.lt.s32.totalorder %s683_s30, %s677_s27 }
  0x1b   : > { %616 = vmatprep.mubr.msk.bf16.mxu0 %vm216_vm0, %v675_v4  ;;  %626 = vmatprep.mubr.msk.bf16.mxu1 %vm216_vm0, %v675_v4 }
  0x1c   : > { %p686_p2 = por %p685_p1, %p684_p0 }
  0x1e   : > { %p687_p3 = pnand %p686_p2, %p680_p13 }
  0x22   : > { %617 = vmatmul.mubr.msk.bf16.gmra.mrb[4].mxu0 %vm216_vm0, %v676_v5  ;;  %627 = vmatmul.mubr.msk.bf16.gmra.mrb[4].mxu1 %vm216_vm0, %v676_v5 }
  0xed   : > { %v614_v8 = vpop.f32.mrb[0].mxu0  ;;  %v624_v9 = vpop.f32.mrb[0].mxu1 }
  0xee   : > { %v272_v10 = vadd.f32 %v614_v8, %v541_v6  ;;  %v386_v11 = vadd.f32 %v624_v9, %v562_v7  ;;  %v263_v12 = vpop.f32.mrb[1].mxu0  ;;  %v377_v13 = vpop.f32.mrb[1].mxu1 }
  0xef   : > { %v264_v14 = vadd.f32 %v541_v6, %v263_v12  ;;  %v378_v15 = vadd.f32 %v562_v7, %v377_v13  ;;  %v615_v16 = vpop.f32.mrb[2].mxu0  ;;  %v625_v17 = vpop.f32.mrb[2].mxu1 }
  0xf0   : > { %v584_v18 = vpack.c.bf16 %v272_v10, %v272_v10  ;;  %v592_v19 = vpack.c.bf16 %v386_v11, %v386_v11  ;;  %v275_v20 = vadd.f32 %v615_v16, %v541_v6  ;;  %v389_v21 = vadd.f32 %v625_v17, %v562_v7  ;;  %v266_v22 = vpop.f32.mrb[3].mxu0  ;;  %v380_v23 = vpop.f32.mrb[3].mxu1 }
  0xf1   : > { %v582_v24 = vpack.c.bf16 %v264_v14, %v264_v14  ;;  %v590_v25 = vpack.c.bf16 %v378_v15, %v378_v15  ;;  %v267_v26 = vadd.f32 %v541_v6, %v266_v22  ;;  %v381_v27 = vadd.f32 %v562_v7, %v380_v23 }
  0xf2   : > { %445 = vst.msk [vmem:[%s831_s17 + $0x10] sm:$0xf] %vm440_vm1, %v584_v18  ;;  %446 = vst.msk [vmem:[%s831_s17 + $0x14] sm:$0xf] %vm440_vm1, %v592_v19  ;;  %v585_v28 = vpack.c.bf16 %v275_v20, %v275_v20  ;;  %v593_v29 = vpack.c.bf16 %v389_v21, %v389_v21 }
  0xf3   : > { %441 = vst.msk [vmem:[%s831_s17] sm:$0xf] %vm440_vm1, %v582_v24  ;;  %442 = vst.msk [vmem:[%s831_s17 + $0x4] sm:$0xf] %vm440_vm1, %v590_v25  ;;  %v583_v30 = vpack.c.bf16 %v267_v26, %v267_v26  ;;  %v591_v31 = vpack.c.bf16 %v381_v27, %v381_v27 }
  0xf4   : > { %447 = vst.msk [vmem:[%s831_s17 + $0x18] sm:$0xf] %vm440_vm1, %v585_v28  ;;  %448 = vst.msk [vmem:[%s831_s17 + $0x1c] sm:$0xf] %vm440_vm1, %v593_v29 }
  0xf5   : > { %443 = vst.msk [vmem:[%s831_s17 + $0x8] sm:$0xf] %vm440_vm1, %v583_v30  ;;  %444 = vst.msk [vmem:[%s831_s17 + $0xc] sm:$0xf] %vm440_vm1, %v591_v31  ;;  %v618_v32 = vpop.f32.mrb[4].mxu0  ;;  %v628_v33 = vpop.f32.mrb[4].mxu1 }
  0xf6   : > { %v288_v34 = vadd.f32 %v618_v32, %v541_v6  ;;  %v402_v35 = vadd.f32 %v628_v33, %v562_v7  ;;  %v279_v36 = vpop.f32.mrb[5].mxu0  ;;  %v393_v37 = vpop.f32.mrb[5].mxu1 }
  0xf7   : > { %v280_v38 = vadd.f32 %v541_v6, %v279_v36  ;;  %v394_v39 = vadd.f32 %v562_v7, %v393_v37  ;;  %v619_v40 = vpop.f32.mrb[6].mxu0  ;;  %v629_v41 = vpop.f32.mrb[6].mxu1 }
  0xf8   : > { %v588_v42 = vpack.c.bf16 %v288_v34, %v288_v34  ;;  %v596_v43 = vpack.c.bf16 %v402_v35, %v402_v35  ;;  %v291_v44 = vadd.f32 %v619_v40, %v541_v6  ;;  %v405_v45 = vadd.f32 %v629_v41, %v562_v7  ;;  %v282_v46 = vpop.f32.mrb[7].mxu0  ;;  %v396_v47 = vpop.f32.mrb[7].mxu1 }
  0xf9   : > { %v586_v48 = vpack.c.bf16 %v280_v38, %v280_v38  ;;  %v594_v49 = vpack.c.bf16 %v394_v39, %v394_v39  ;;  %v283_v50 = vadd.f32 %v541_v6, %v282_v46  ;;  %v397_v51 = vadd.f32 %v562_v7, %v396_v47 }
  0xfa   : > { %453 = vst.msk [vmem:[%s831_s17 + $0x30] sm:$0xf] %vm440_vm1, %v588_v42  ;;  %454 = vst.msk [vmem:[%s831_s17 + $0x34] sm:$0xf] %vm440_vm1, %v596_v43  ;;  %v589_v52 = vpack.c.bf16 %v291_v44, %v291_v44  ;;  %v597_v53 = vpack.c.bf16 %v405_v45, %v405_v45 }
  0xfb   : > { %449 = vst.msk [vmem:[%s831_s17 + $0x20] sm:$0xf] %vm440_vm1, %v586_v48  ;;  %450 = vst.msk [vmem:[%s831_s17 + $0x24] sm:$0xf] %vm440_vm1, %v594_v49  ;;  %v587_v54 = vpack.c.bf16 %v283_v50, %v283_v50  ;;  %v595_v55 = vpack.c.bf16 %v397_v51, %v397_v51 }
  0xfc   : > { %455 = vst.msk [vmem:[%s831_s17 + $0x38] sm:$0xf] %vm440_vm1, %v589_v52  ;;  %456 = vst.msk [vmem:[%s831_s17 + $0x3c] sm:$0xf] %vm440_vm1, %v597_v53 }
  0xfd   : > { %451 = vst.msk [vmem:[%s831_s17 + $0x28] sm:$0xf] %vm440_vm1, %v587_v54  ;;  %452 = vst.msk [vmem:[%s831_s17 + $0x2c] sm:$0xf] %vm440_vm1, %v595_v55 }
  0xfe   : > { %690 = shalt.err (!%p687_p3)
}
  0xff   : > { %s691_s4 = scalar_lea.hbm %s858_s25, 1024  ;;  %s695_s7 = scalar_lea.hbm %s920_s3, 2048 }
 0x100   : > { %p692_p4 = scmp.ne.s32.totalorder %s858_s25, %s691_s4  ;;  %p696_p9 = scmp.lt.u32.totalorder %s858_s25, %s920_s3 }
 0x101   : > { %p697_p10 = scmp.lt.u32.totalorder %s695_s7, %s691_s4  ;;  %p699_p12 = scmp.lt.u32.totalorder %s691_s4, %s858_s25 }
 0x102   : > { %p693_p7 = pnand %p692_p4, %p802_p5 }
 0x103   : > { %p698_p11 = por %p697_p10, %p696_p9 }
 0x104   : > { %p694_p8 = pneg %p693_p7 }
 0x105   : > { %p700_p13 = por %p699_p12, %p698_p11 }
 0x107   : > { %p701_p0 = pnand %p700_p13, %p694_p8 }
 0x109   : > { %704 = shalt.err (!%p701_p0)
}
 0x10a   : > { %s742_s10 = smov 64   ;;  %s743_s11 = smov 4  }
 0x10b   : > { %630 = dma.vmem_to_hbm [thread:$0]  (%p802_p5), %s860_s20, 1024, %s858_s25, %s876_s26, %s742_s10, %s742_s10, %s743_s11  }
 0x10c PF: > { %p636_p1 = scmp.ge.s32.totalorder %s739_s15, 2  ;;  %s487_s17 = sand.u32 1, %s727_s12  }
 0x10d   : > { %s488_s19 = scalar_lea.sflag [#allocation3], %s487_s17 }
 0x10e   : > { %p633_p2 = pnand %p636_p1, %p806_p6 }
 0x110   : > { %722 = dma.done.wait (!%p633_p2), %s488_s19, 1024  }
 0x111   : > { %724 = vsyncadd (!%p633_p2), %s488_s19, 4294966272  ;;  %p13_p3 = scmp.ge.s32.totalorder %s789_s18, 4   ;;  %s923_s12 = smov %s731_s13 }
 0x112   : > { %s924_s13 = smov %s735_s14  ;;  %s925_s14 = smov %s800_s21 }
 0x113   : > { %s926_s15 = smov %s789_s18  ;;  %15 = sbr.rel (!%p13_p3) target bundleno = 3 (0x3), region = 69 }
 0x11a   :  { %493 = vsyncpa [#allocation3], 1 }
 0x11b   :  { %495 = vsyncpa [#allocation3 + $0x1], 1 }

</bundles_post_ra>
